<compile_context>
chip_gen: v5e
topology: v5e:2x2
jax: 0.10.0
libtpu: 0.0.40
codegen_flags: <defaults>
</compile_context>

<pallas_src>
import math
import numpy as np
import jax
import jax.numpy as jnp
from jax import lax
from jax.experimental import pallas as pl
from jax.experimental.pallas import tpu as pltpu

# ---------------- config (small, consistent with the module) ----------------
HIDDEN = 32
NUM_HEADS = 4
NUM_KV_HEADS = 2
HEAD_DIM = HIDDEN // NUM_HEADS                     # 8
N_REP = NUM_HEADS // NUM_KV_HEADS                  # 2
MP_SIZE = 2                                        # model_parallel_size
MAX_POS = 32                                       # max_position_embeddings
ROPE_THETA = 10000.0
EPS = 1e-5                                         # ChameleonLayerNorm eps
QK_W = (NUM_HEADS + NUM_KV_HEADS) * HEAD_DIM       # 48 (q-slab + k-slab width)
QKV_W = (NUM_HEADS + 2 * NUM_KV_HEADS) * HEAD_DIM  # 64 (q + k + v)
SCALE = 1.0 / math.sqrt(HEAD_DIM)
NEG_INF = -1e9


# ---------------- fused Pallas kernel ----------------
def _fused_attn_kernel(x_ref, wqkv_ref, wo_ref, gamma_ref, beta_ref,
                       avg_ref, rot_ref, cos_ref, sin_ref, o_ref):
    # x: (S, HIDDEN); wqkv: (HIDDEN, QKV_W); wo: (HIDDEN, HIDDEN)
    # gamma/beta: (1, QK_W); avg/rot: (QK_W, QK_W) block-diagonal; cos/sin: (S, QK_W)
    D = HEAD_DIM
    S = x_ref.shape[0]

    x = x_ref[...]
    # Fused q/k/v projection (one MXU matmul).
    qkv = jnp.dot(x, wqkv_ref[...], preferred_element_type=jnp.float32)   # (S, 64)
    qk = qkv[:, :QK_W]                                                    # (S, 48)
    v = qkv[:, QK_W:]                                                     # (S, 16)

    # ChameleonLayerNorm per head: stats over each head's D lanes, done as a
    # block-diagonal averaging matmul so the slab stays lane-dense 2-D.
    avg = avg_ref[...]
    mu = jnp.dot(qk, avg, preferred_element_type=jnp.float32)
    xc = qk - mu
    var = jnp.dot(xc * xc, avg, preferred_element_type=jnp.float32)
    qkn = xc * lax.rsqrt(var + EPS) * gamma_ref[...] + beta_ref[...]

    # RoPE: rotate_half (with its sign) folded into a signed block-diag permutation.
    rot = jnp.dot(qkn, rot_ref[...], preferred_element_type=jnp.float32)
    qkr = qkn * cos_ref[...] + rot * sin_ref[...]

    q = qkr[:, :NUM_HEADS * D] * SCALE     # fold 1/sqrt(D) into q
    k = qkr[:, NUM_HEADS * D:]             # (S, Hkv*D), NOT repeated (GQA in-kernel)

    # Causal mask generated in-kernel (no HBM mask traffic).
    row = lax.broadcasted_iota(jnp.int32, (S, S), 0)
    col = lax.broadcasted_iota(jnp.int32, (S, S), 1)
    causal = jnp.where(row >= col, 0.0, NEG_INF).astype(jnp.float32)

    dn_nt = (((1,), (1,)), ((), ()))   # A @ B.T
    dn_nn = (((1,), (0,)), ((), ()))   # A @ B

    head_outs = []
    for h in range(NUM_HEADS):         # static unroll, H=4
        g = h // N_REP                 # q head -> kv head (repeat_interleave mapping)
        q_h = q[:, h * D:(h + 1) * D]
        k_g = k[:, g * D:(g + 1) * D]
        v_g = v[:, g * D:(g + 1) * D]
        s = lax.dot_general(q_h, k_g, dn_nt, preferred_element_type=jnp.float32)
        s = s + causal
        s = s - jnp.max(s, axis=-1, keepdims=True)
        p = jnp.exp(s)
        p = p * pl.reciprocal(jnp.sum(p, axis=-1, keepdims=True), approx=True)
        head_outs.append(
            lax.dot_general(p, v_g, dn_nn, preferred_element_type=jnp.float32))
    attn = jnp.concatenate(head_outs, axis=-1)                            # (S, H*D)

    # Output projection fused into the same kernel.
    o_ref[...] = jnp.dot(attn, wo_ref[...], preferred_element_type=jnp.float32)


def chameleon_flash_attention_forward(hidden_states, position_ids, prep):
    """hidden_states: (B, S, HIDDEN) f32; position_ids: (B, S) i32."""
    B, S, Hd = hidden_states.shape
    nb = NUM_HEADS + NUM_KV_HEADS
    # Gather RoPE cos/sin by position and tile across the (q + k) head blocks.
    cos_b = jnp.tile(prep['cos_cache'][position_ids], (1, 1, nb))   # (B, S, QK_W)
    sin_b = jnp.tile(prep['sin_cache'][position_ids], (1, 1, nb))   # (B, S, QK_W)

    return pl.pallas_call(
        _fused_attn_kernel,
        out_shape=jax.ShapeDtypeStruct((B, S, Hd), jnp.float32),
        grid=(B,),
        in_specs=[
            pl.BlockSpec((None, S, Hd), lambda b: (b, 0, 0)),       # x (per batch)
            pl.BlockSpec((Hd, QKV_W), lambda b: (0, 0)),            # fused qkv weight
            pl.BlockSpec((Hd, Hd), lambda b: (0, 0)),               # o_proj weight
            pl.BlockSpec((1, QK_W), lambda b: (0, 0)),              # gamma
            pl.BlockSpec((1, QK_W), lambda b: (0, 0)),              # beta
            pl.BlockSpec((QK_W, QK_W), lambda b: (0, 0)),           # per-head avg mat
            pl.BlockSpec((QK_W, QK_W), lambda b: (0, 0)),           # rotate_half mat
            pl.BlockSpec((None, S, QK_W), lambda b: (b, 0, 0)),     # cos (per batch)
            pl.BlockSpec((None, S, QK_W), lambda b: (b, 0, 0)),     # sin (per batch)
        ],
        out_specs=pl.BlockSpec((None, S, Hd), lambda b: (b, 0, 0)),
        compiler_params=pltpu.CompilerParams(
            dimension_semantics=("parallel",)),                     # 2 TCs on v7x
    )(hidden_states, prep['wqkv_t'], prep['wo_t'], prep['gamma'], prep['beta'],
      prep['avg_mat'], prep['rot_mat'], cos_b, sin_b)


# ---------------- parameter init / one-time prep (glue, done once) ----------------
def init_params(key):
    ks = jax.random.split(key, 8)
    s = 0.02
    return dict(
        wq=jax.random.normal(ks[0], (NUM_HEADS * HEAD_DIM, HIDDEN), jnp.float32) * s,
        wk=jax.random.normal(ks[1], (NUM_KV_HEADS * HEAD_DIM, HIDDEN), jnp.float32) * s,
        wv=jax.random.normal(ks[2], (NUM_KV_HEADS * HEAD_DIM, HIDDEN), jnp.float32) * s,
        wo=jax.random.normal(ks[3], (HIDDEN, HIDDEN), jnp.float32) * s,
        q_norm_w=1.0 + 0.1 * jax.random.normal(ks[4], (MP_SIZE, HEAD_DIM), jnp.float32),
        q_norm_b=0.1 * jax.random.normal(ks[5], (MP_SIZE, HEAD_DIM), jnp.float32),
        k_norm_w=1.0 + 0.1 * jax.random.normal(ks[6], (MP_SIZE, HEAD_DIM), jnp.float32),
        k_norm_b=0.1 * jax.random.normal(ks[7], (MP_SIZE, HEAD_DIM), jnp.float32),
    )


def rope_cache(max_pos, dim, theta):
    inv_freq = 1.0 / (theta ** (jnp.arange(0, dim, 2, dtype=jnp.float32) / dim))
    t = jnp.arange(max_pos, dtype=jnp.float32)
    freqs = jnp.outer(t, inv_freq)
    emb = jnp.concatenate([freqs, freqs], axis=-1)
    return jnp.cos(emb), jnp.sin(emb)


def prepare_params(params):
    """One-time prep: fused+pre-transposed weights, repeated LN params, constant mats."""
    D = HEAD_DIM
    nb = NUM_HEADS + NUM_KV_HEADS

    wqkv_t = jnp.concatenate([params['wq'], params['wk'], params['wv']], axis=0).T
    wo_t = params['wo'].T

    # ChameleonLayerNorm.repeat_param == repeat_interleave along head dim
    qw = jnp.repeat(params['q_norm_w'], NUM_HEADS // MP_SIZE, axis=0).reshape(1, -1)
    qb = jnp.repeat(params['q_norm_b'], NUM_HEADS // MP_SIZE, axis=0).reshape(1, -1)
    kw = jnp.repeat(params['k_norm_w'], NUM_KV_HEADS // MP_SIZE, axis=0).reshape(1, -1)
    kb = jnp.repeat(params['k_norm_b'], NUM_KV_HEADS // MP_SIZE, axis=0).reshape(1, -1)
    gamma = jnp.concatenate([qw, kw], axis=-1)     # (1, QK_W)
    beta = jnp.concatenate([qb, kb], axis=-1)      # (1, QK_W)

    # Block-diagonal matrices: per-head averaging and signed rotate_half permutation.
    half = D // 2
    avg_block = np.full((D, D), 1.0 / D, np.float32)
    rot_block = np.zeros((D, D), np.float32)
    for j in range(half):
        rot_block[j + half, j] = -1.0              # out[:, j]      = -in[:, j+half]
        rot_block[j, j + half] = 1.0               # out[:, j+half] =  in[:, j]
    avg_mat = np.zeros((nb * D, nb * D), np.float32)
    rot_mat = np.zeros((nb * D, nb * D), np.float32)
    for i in range(nb):
        avg_mat[i * D:(i + 1) * D, i * D:(i + 1) * D] = avg_block
        rot_mat[i * D:(i + 1) * D, i * D:(i + 1) * D] = rot_block

    cos_c, sin_c = rope_cache(MAX_POS, D, ROPE_THETA)
    return dict(wqkv_t=wqkv_t, wo_t=wo_t, gamma=gamma, beta=beta,
                avg_mat=jnp.asarray(avg_mat), rot_mat=jnp.asarray(rot_mat),
                cos_cache=cos_c, sin_cache=sin_c)


# ---------------- pure-JAX reference (mirrors the PyTorch module) ----------------
def reference_forward(hidden_states, position_ids, params):
    bsz, q_len, hidden = hidden_states.shape
    H, Hkv, D = NUM_HEADS, NUM_KV_HEADS, HEAD_DIM
    q = hidden_states @ params['wq'].T
    k = hidden_states @ params['wk'].T
    v = hidden_states @ params['wv'].T

    def ln(x, w, b):
        mu = x.mean(-1, keepdims=True)
        var = ((x - mu) ** 2).mean(-1, keepdims=True)
        return (x - mu) / jnp.sqrt(var + EPS) * w + b

    qw = jnp.repeat(params['q_norm_w'], H // MP_SIZE, axis=0)
    qb = jnp.repeat(params['q_norm_b'], H // MP_SIZE, axis=0)
    kw = jnp.repeat(params['k_norm_w'], Hkv // MP_SIZE, axis=0)
    kb = jnp.repeat(params['k_norm_b'], Hkv // MP_SIZE, axis=0)
    q = ln(q.reshape(-1, H, D), qw, qb)
    k = ln(k.reshape(-1, Hkv, D), kw, kb)

    q = q.reshape(bsz, q_len, H, D).transpose(0, 2, 1, 3)
    k = k.reshape(bsz, q_len, Hkv, D).transpose(0, 2, 1, 3)
    v = v.reshape(bsz, q_len, Hkv, D).transpose(0, 2, 1, 3)

    cos_c, sin_c = rope_cache(MAX_POS, D, ROPE_THETA)
    cos = cos_c[position_ids][:, None, :, :]
    sin = sin_c[position_ids][:, None, :, :]

    def rot_half(x):
        x1, x2 = x[..., :D // 2], x[..., D // 2:]
        return jnp.concatenate([-x2, x1], axis=-1)

    q = q * cos + rot_half(q) * sin
    k = k * cos + rot_half(k) * sin

    k = jnp.repeat(k, N_REP, axis=1)
    v = jnp.repeat(v, N_REP, axis=1)

    causal = jnp.triu(jnp.full((q_len, q_len), NEG_INF, jnp.float32), k=1)
    scores = jnp.einsum('bhqd,bhkd->bhqk', q, k) / math.sqrt(D) + causal
    p = jax.nn.softmax(scores, axis=-1)
    attn = jnp.einsum('bhqk,bhkd->bhqd', p, v)
    attn = attn.transpose(0, 2, 1, 3).reshape(bsz, q_len, hidden)
    return attn @ params['wo'].T


if __name__ == "__main__":
    key = jax.random.PRNGKey(0)
    kx, kp = jax.random.split(key)
    bsz, q_len = 2, 8

    hidden_states = jax.random.normal(kx, (bsz, q_len, HIDDEN), jnp.float32)
    position_ids = jnp.broadcast_to(jnp.arange(q_len, dtype=jnp.int32), (bsz, q_len))
    params = init_params(kp)
    prep = prepare_params(params)

    out = chameleon_flash_attention_forward(hidden_states, position_ids, prep)
    out = jax.block_until_ready(out)

    ref = reference_forward(hidden_states, position_ids, params)
    assert out.shape == (bsz, q_len, HIDDEN)
    assert np.allclose(np.asarray(out), np.asarray(ref), rtol=1e-4, atol=1e-4), \
        "Pallas output mismatch vs reference"
    print("KERNEL_OK")
</pallas_src>

<mosaic_0001>
module attributes {stable_mosaic.version = 11 : i64} {
  func.func @_fused_attn_kernel(%arg0: i32, %arg1: memref<1x8x32xf32, #tpu.memory_space<vmem>>, %arg2: memref<32x64xf32, #tpu.memory_space<vmem>>, %arg3: memref<32x32xf32, #tpu.memory_space<vmem>>, %arg4: memref<1x48xf32, #tpu.memory_space<vmem>>, %arg5: memref<1x48xf32, #tpu.memory_space<vmem>>, %arg6: memref<48x48xf32, #tpu.memory_space<vmem>>, %arg7: memref<48x48xf32, #tpu.memory_space<vmem>>, %arg8: memref<1x8x48xf32, #tpu.memory_space<vmem>>, %arg9: memref<1x8x48xf32, #tpu.memory_space<vmem>>, %arg10: memref<1x8x32xf32, #tpu.memory_space<vmem>>) attributes {dimension_semantics = [#tpu.dimension_semantics<parallel>], iteration_bounds = array<i64: 2>, scalar_prefetch = 0 : i64, scratch_operands = 0 : i64, tpu.core_type = #tpu.core_type<tc>, window_params = [{transform_indices = @transform_0, window_bounds = array<i64: 1, 8, 32>}, {pipeline_mode = #tpu.pipeline_mode<synchronous>, transform_indices = @transform_1, window_bounds = array<i64: 32, 64>}, {pipeline_mode = #tpu.pipeline_mode<synchronous>, transform_indices = @transform_2, window_bounds = array<i64: 32, 32>}, {pipeline_mode = #tpu.pipeline_mode<synchronous>, transform_indices = @transform_3, window_bounds = array<i64: 1, 48>}, {pipeline_mode = #tpu.pipeline_mode<synchronous>, transform_indices = @transform_4, window_bounds = array<i64: 1, 48>}, {pipeline_mode = #tpu.pipeline_mode<synchronous>, transform_indices = @transform_5, window_bounds = array<i64: 48, 48>}, {pipeline_mode = #tpu.pipeline_mode<synchronous>, transform_indices = @transform_6, window_bounds = array<i64: 48, 48>}, {transform_indices = @transform_7, window_bounds = array<i64: 1, 8, 48>}, {transform_indices = @transform_8, window_bounds = array<i64: 1, 8, 48>}, {transform_indices = @transform_9, window_bounds = array<i64: 1, 8, 32>}]} {
    %c0 = arith.constant 0 : index
    %c0_0 = arith.constant 0 : index
    %c0_1 = arith.constant 0 : index
    %0 = vector.load %arg1[%c0, %c0_0, %c0_1] : memref<1x8x32xf32, #tpu.memory_space<vmem>>, vector<1x8x32xf32>
    %1 = vector.shape_cast %0 : vector<1x8x32xf32> to vector<8x32xf32>
    %c0_2 = arith.constant 0 : index
    %c0_3 = arith.constant 0 : index
    %2 = vector.load %arg2[%c0_2, %c0_3] : memref<32x64xf32, #tpu.memory_space<vmem>>, vector<32x64xf32>
    %cst = arith.constant dense<0.000000e+00> : vector<8x64xf32>
    %3 = tpu.matmul %1, %2, %cst {dimension_numbers = #tpu.dot_dimension_numbers<[1], [0], [0], [1], [0, 0, 1, 1], [], []>} : vector<8x32xf32>, vector<32x64xf32>, vector<8x64xf32> -> vector<8x64xf32>
    %4 = vector.extract_strided_slice %3 {offsets = [0, 0], sizes = [8, 48], strides = [1, 1]} : vector<8x64xf32> to vector<8x48xf32>
    %5 = vector.extract_strided_slice %3 {offsets = [0, 48], sizes = [8, 16], strides = [1, 1]} : vector<8x64xf32> to vector<8x16xf32>
    %c0_4 = arith.constant 0 : index
    %c0_5 = arith.constant 0 : index
    %6 = vector.load %arg6[%c0_4, %c0_5] : memref<48x48xf32, #tpu.memory_space<vmem>>, vector<48x48xf32>
    %cst_6 = arith.constant dense<0.000000e+00> : vector<8x48xf32>
    %7 = tpu.matmul %4, %6, %cst_6 {dimension_numbers = #tpu.dot_dimension_numbers<[1], [0], [0], [1], [0, 0, 1, 1], [], []>} : vector<8x48xf32>, vector<48x48xf32>, vector<8x48xf32> -> vector<8x48xf32>
    %8 = arith.subf %4, %7 : vector<8x48xf32>
    %9 = arith.mulf %8, %8 : vector<8x48xf32>
    %cst_7 = arith.constant dense<0.000000e+00> : vector<8x48xf32>
    %10 = tpu.matmul %9, %6, %cst_7 {dimension_numbers = #tpu.dot_dimension_numbers<[1], [0], [0], [1], [0, 0, 1, 1], [], []>} : vector<8x48xf32>, vector<48x48xf32>, vector<8x48xf32> -> vector<8x48xf32>
    %cst_8 = arith.constant 9.99999974E-6 : f32
    %11 = vector.broadcast %cst_8 : f32 to vector<8x48xf32>
    %12 = arith.addf %10, %11 : vector<8x48xf32>
    %13 = math.rsqrt %12 : vector<8x48xf32>
    %14 = arith.mulf %8, %13 : vector<8x48xf32>
    %c0_9 = arith.constant 0 : index
    %c0_10 = arith.constant 0 : index
    %15 = vector.load %arg4[%c0_9, %c0_10] : memref<1x48xf32, #tpu.memory_space<vmem>>, vector<1x48xf32>
    %16 = vector.broadcast %15 : vector<1x48xf32> to vector<8x48xf32>
    %17 = arith.mulf %14, %16 : vector<8x48xf32>
    %c0_11 = arith.constant 0 : index
    %c0_12 = arith.constant 0 : index
    %18 = vector.load %arg5[%c0_11, %c0_12] : memref<1x48xf32, #tpu.memory_space<vmem>>, vector<1x48xf32>
    %19 = vector.broadcast %18 : vector<1x48xf32> to vector<8x48xf32>
    %20 = arith.addf %17, %19 : vector<8x48xf32>
    %c0_13 = arith.constant 0 : index
    %c0_14 = arith.constant 0 : index
    %21 = vector.load %arg7[%c0_13, %c0_14] : memref<48x48xf32, #tpu.memory_space<vmem>>, vector<48x48xf32>
    %cst_15 = arith.constant dense<0.000000e+00> : vector<8x48xf32>
    %22 = tpu.matmul %20, %21, %cst_15 {dimension_numbers = #tpu.dot_dimension_numbers<[1], [0], [0], [1], [0, 0, 1, 1], [], []>} : vector<8x48xf32>, vector<48x48xf32>, vector<8x48xf32> -> vector<8x48xf32>
    %c0_16 = arith.constant 0 : index
    %c0_17 = arith.constant 0 : index
    %c0_18 = arith.constant 0 : index
    %23 = vector.load %arg8[%c0_16, %c0_17, %c0_18] : memref<1x8x48xf32, #tpu.memory_space<vmem>>, vector<1x8x48xf32>
    %24 = vector.shape_cast %23 : vector<1x8x48xf32> to vector<8x48xf32>
    %25 = arith.mulf %20, %24 : vector<8x48xf32>
    %c0_19 = arith.constant 0 : index
    %c0_20 = arith.constant 0 : index
    %c0_21 = arith.constant 0 : index
    %26 = vector.load %arg9[%c0_19, %c0_20, %c0_21] : memref<1x8x48xf32, #tpu.memory_space<vmem>>, vector<1x8x48xf32>
    %27 = vector.shape_cast %26 : vector<1x8x48xf32> to vector<8x48xf32>
    %28 = arith.mulf %22, %27 : vector<8x48xf32>
    %29 = arith.addf %25, %28 : vector<8x48xf32>
    %30 = vector.extract_strided_slice %29 {offsets = [0, 0], sizes = [8, 32], strides = [1, 1]} : vector<8x48xf32> to vector<8x32xf32>
    %cst_22 = arith.constant 0.353553385 : f32
    %31 = vector.broadcast %cst_22 : f32 to vector<8x32xf32>
    %32 = arith.mulf %30, %31 : vector<8x32xf32>
    %33 = vector.extract_strided_slice %29 {offsets = [0, 32], sizes = [8, 16], strides = [1, 1]} : vector<8x48xf32> to vector<8x16xf32>
    %34 = tpu.iota {dimensions = array<i32: 0>} : vector<8x8xi32>
    %35 = tpu.iota {dimensions = array<i32: 1>} : vector<8x8xi32>
    %36 = arith.cmpi sge, %34, %35 : vector<8x8xi32>
    %cst_23 = arith.constant 0.000000e+00 : f32
    %cst_24 = arith.constant -1.000000e+09 : f32
    %37 = vector.broadcast %cst_23 : f32 to vector<8x8xf32>
    %38 = vector.broadcast %cst_24 : f32 to vector<8x8xf32>
    %39 = arith.select %36, %37, %38 : vector<8x8xi1>, vector<8x8xf32>
    %40 = vector.extract_strided_slice %32 {offsets = [0, 0], sizes = [8, 8], strides = [1, 1]} : vector<8x32xf32> to vector<8x8xf32>
    %41 = vector.extract_strided_slice %33 {offsets = [0, 0], sizes = [8, 8], strides = [1, 1]} : vector<8x16xf32> to vector<8x8xf32>
    %42 = vector.extract_strided_slice %5 {offsets = [0, 0], sizes = [8, 8], strides = [1, 1]} : vector<8x16xf32> to vector<8x8xf32>
    %cst_25 = arith.constant dense<0.000000e+00> : vector<8x8xf32>
    %43 = tpu.matmul %40, %41, %cst_25 {dimension_numbers = #tpu.dot_dimension_numbers<[1], [1], [0], [0], [0, 0, 1, 0], [], []>} : vector<8x8xf32>, vector<8x8xf32>, vector<8x8xf32> -> vector<8x8xf32>
    %44 = arith.addf %43, %39 : vector<8x8xf32>
    %cst_26 = arith.constant dense<0xFF800000> : vector<8xf32>
    %45 = vector.multi_reduction <maximumf>, %44, %cst_26 [1] : vector<8x8xf32> to vector<8xf32>
    %46 = vector.shape_cast %45 : vector<8xf32> to vector<8x1xf32>
    %47 = vector.broadcast %46 : vector<8x1xf32> to vector<8x8xf32>
    %48 = arith.subf %44, %47 : vector<8x8xf32>
    %49 = math.exp %48 : vector<8x8xf32>
    %cst_27 = arith.constant dense<0.000000e+00> : vector<8xf32>
    %50 = vector.multi_reduction <add>, %49, %cst_27 [1] : vector<8x8xf32> to vector<8xf32>
    %51 = vector.shape_cast %50 : vector<8xf32> to vector<8x1xf32>
    %52 = tpu.reciprocal %51 {approx = true} : vector<8x1xf32> -> vector<8x1xf32>
    %53 = vector.broadcast %52 : vector<8x1xf32> to vector<8x8xf32>
    %54 = arith.mulf %49, %53 : vector<8x8xf32>
    %cst_28 = arith.constant dense<0.000000e+00> : vector<8x8xf32>
    %55 = tpu.matmul %54, %42, %cst_28 {dimension_numbers = #tpu.dot_dimension_numbers<[1], [0], [0], [1], [0, 0, 1, 1], [], []>} : vector<8x8xf32>, vector<8x8xf32>, vector<8x8xf32> -> vector<8x8xf32>
    %56 = vector.extract_strided_slice %32 {offsets = [0, 8], sizes = [8, 8], strides = [1, 1]} : vector<8x32xf32> to vector<8x8xf32>
    %57 = vector.extract_strided_slice %33 {offsets = [0, 0], sizes = [8, 8], strides = [1, 1]} : vector<8x16xf32> to vector<8x8xf32>
    %58 = vector.extract_strided_slice %5 {offsets = [0, 0], sizes = [8, 8], strides = [1, 1]} : vector<8x16xf32> to vector<8x8xf32>
    %cst_29 = arith.constant dense<0.000000e+00> : vector<8x8xf32>
    %59 = tpu.matmul %56, %57, %cst_29 {dimension_numbers = #tpu.dot_dimension_numbers<[1], [1], [0], [0], [0, 0, 1, 0], [], []>} : vector<8x8xf32>, vector<8x8xf32>, vector<8x8xf32> -> vector<8x8xf32>
    %60 = arith.addf %59, %39 : vector<8x8xf32>
    %cst_30 = arith.constant dense<0xFF800000> : vector<8xf32>
    %61 = vector.multi_reduction <maximumf>, %60, %cst_30 [1] : vector<8x8xf32> to vector<8xf32>
    %62 = vector.shape_cast %61 : vector<8xf32> to vector<8x1xf32>
    %63 = vector.broadcast %62 : vector<8x1xf32> to vector<8x8xf32>
    %64 = arith.subf %60, %63 : vector<8x8xf32>
    %65 = math.exp %64 : vector<8x8xf32>
    %cst_31 = arith.constant dense<0.000000e+00> : vector<8xf32>
    %66 = vector.multi_reduction <add>, %65, %cst_31 [1] : vector<8x8xf32> to vector<8xf32>
    %67 = vector.shape_cast %66 : vector<8xf32> to vector<8x1xf32>
    %68 = tpu.reciprocal %67 {approx = true} : vector<8x1xf32> -> vector<8x1xf32>
    %69 = vector.broadcast %68 : vector<8x1xf32> to vector<8x8xf32>
    %70 = arith.mulf %65, %69 : vector<8x8xf32>
    %cst_32 = arith.constant dense<0.000000e+00> : vector<8x8xf32>
    %71 = tpu.matmul %70, %58, %cst_32 {dimension_numbers = #tpu.dot_dimension_numbers<[1], [0], [0], [1], [0, 0, 1, 1], [], []>} : vector<8x8xf32>, vector<8x8xf32>, vector<8x8xf32> -> vector<8x8xf32>
    %72 = vector.extract_strided_slice %32 {offsets = [0, 16], sizes = [8, 8], strides = [1, 1]} : vector<8x32xf32> to vector<8x8xf32>
    %73 = vector.extract_strided_slice %33 {offsets = [0, 8], sizes = [8, 8], strides = [1, 1]} : vector<8x16xf32> to vector<8x8xf32>
    %74 = vector.extract_strided_slice %5 {offsets = [0, 8], sizes = [8, 8], strides = [1, 1]} : vector<8x16xf32> to vector<8x8xf32>
    %cst_33 = arith.constant dense<0.000000e+00> : vector<8x8xf32>
    %75 = tpu.matmul %72, %73, %cst_33 {dimension_numbers = #tpu.dot_dimension_numbers<[1], [1], [0], [0], [0, 0, 1, 0], [], []>} : vector<8x8xf32>, vector<8x8xf32>, vector<8x8xf32> -> vector<8x8xf32>
    %76 = arith.addf %75, %39 : vector<8x8xf32>
    %cst_34 = arith.constant dense<0xFF800000> : vector<8xf32>
    %77 = vector.multi_reduction <maximumf>, %76, %cst_34 [1] : vector<8x8xf32> to vector<8xf32>
    %78 = vector.shape_cast %77 : vector<8xf32> to vector<8x1xf32>
    %79 = vector.broadcast %78 : vector<8x1xf32> to vector<8x8xf32>
    %80 = arith.subf %76, %79 : vector<8x8xf32>
    %81 = math.exp %80 : vector<8x8xf32>
    %cst_35 = arith.constant dense<0.000000e+00> : vector<8xf32>
    %82 = vector.multi_reduction <add>, %81, %cst_35 [1] : vector<8x8xf32> to vector<8xf32>
    %83 = vector.shape_cast %82 : vector<8xf32> to vector<8x1xf32>
    %84 = tpu.reciprocal %83 {approx = true} : vector<8x1xf32> -> vector<8x1xf32>
    %85 = vector.broadcast %84 : vector<8x1xf32> to vector<8x8xf32>
    %86 = arith.mulf %81, %85 : vector<8x8xf32>
    %cst_36 = arith.constant dense<0.000000e+00> : vector<8x8xf32>
    %87 = tpu.matmul %86, %74, %cst_36 {dimension_numbers = #tpu.dot_dimension_numbers<[1], [0], [0], [1], [0, 0, 1, 1], [], []>} : vector<8x8xf32>, vector<8x8xf32>, vector<8x8xf32> -> vector<8x8xf32>
    %88 = vector.extract_strided_slice %32 {offsets = [0, 24], sizes = [8, 8], strides = [1, 1]} : vector<8x32xf32> to vector<8x8xf32>
    %89 = vector.extract_strided_slice %33 {offsets = [0, 8], sizes = [8, 8], strides = [1, 1]} : vector<8x16xf32> to vector<8x8xf32>
    %90 = vector.extract_strided_slice %5 {offsets = [0, 8], sizes = [8, 8], strides = [1, 1]} : vector<8x16xf32> to vector<8x8xf32>
    %cst_37 = arith.constant dense<0.000000e+00> : vector<8x8xf32>
    %91 = tpu.matmul %88, %89, %cst_37 {dimension_numbers = #tpu.dot_dimension_numbers<[1], [1], [0], [0], [0, 0, 1, 0], [], []>} : vector<8x8xf32>, vector<8x8xf32>, vector<8x8xf32> -> vector<8x8xf32>
    %92 = arith.addf %91, %39 : vector<8x8xf32>
    %cst_38 = arith.constant dense<0xFF800000> : vector<8xf32>
    %93 = vector.multi_reduction <maximumf>, %92, %cst_38 [1] : vector<8x8xf32> to vector<8xf32>
    %94 = vector.shape_cast %93 : vector<8xf32> to vector<8x1xf32>
    %95 = vector.broadcast %94 : vector<8x1xf32> to vector<8x8xf32>
    %96 = arith.subf %92, %95 : vector<8x8xf32>
    %97 = math.exp %96 : vector<8x8xf32>
    %cst_39 = arith.constant dense<0.000000e+00> : vector<8xf32>
    %98 = vector.multi_reduction <add>, %97, %cst_39 [1] : vector<8x8xf32> to vector<8xf32>
    %99 = vector.shape_cast %98 : vector<8xf32> to vector<8x1xf32>
    %100 = tpu.reciprocal %99 {approx = true} : vector<8x1xf32> -> vector<8x1xf32>
    %101 = vector.broadcast %100 : vector<8x1xf32> to vector<8x8xf32>
    %102 = arith.mulf %97, %101 : vector<8x8xf32>
    %cst_40 = arith.constant dense<0.000000e+00> : vector<8x8xf32>
    %103 = tpu.matmul %102, %90, %cst_40 {dimension_numbers = #tpu.dot_dimension_numbers<[1], [0], [0], [1], [0, 0, 1, 1], [], []>} : vector<8x8xf32>, vector<8x8xf32>, vector<8x8xf32> -> vector<8x8xf32>
    %104 = tpu.concatenate %55, %71, %87, %103 in 1 : vector<8x8xf32>, vector<8x8xf32>, vector<8x8xf32>, vector<8x8xf32> -> vector<8x32xf32>
    %c0_41 = arith.constant 0 : index
    %c0_42 = arith.constant 0 : index
    %105 = vector.load %arg3[%c0_41, %c0_42] : memref<32x32xf32, #tpu.memory_space<vmem>>, vector<32x32xf32>
    %cst_43 = arith.constant dense<0.000000e+00> : vector<8x32xf32>
    %106 = tpu.matmul %104, %105, %cst_43 {dimension_numbers = #tpu.dot_dimension_numbers<[1], [0], [0], [1], [0, 0, 1, 1], [], []>} : vector<8x32xf32>, vector<32x32xf32>, vector<8x32xf32> -> vector<8x32xf32>
    %c0_44 = arith.constant 0 : index
    %c0_45 = arith.constant 0 : index
    %c0_46 = arith.constant 0 : index
    %107 = vector.load %arg10[%c0_44, %c0_45, %c0_46] : memref<1x8x32xf32, #tpu.memory_space<vmem>>, vector<1x8x32xf32>
    %108 = vector.shape_cast %107 : vector<1x8x32xf32> to vector<8x32xf32>
    %109 = vector.shape_cast %106 : vector<8x32xf32> to vector<1x8x32xf32>
    tpu.vector_store %arg10[%c0_44, %c0_45, %c0_46], %109 {strides = array<i32>} : memref<1x8x32xf32, #tpu.memory_space<vmem>>, vector<1x8x32xf32>,
    return
  }
  func.func @transform_0(%arg0: i32) -> (i32, i32, i32) {
    %c0_i32 = arith.constant 0 : i32
    %c0_i32_0 = arith.constant 0 : i32
    %c0_i32_1 = arith.constant 0 : i32
    return %arg0, %c0_i32, %c0_i32_0 : i32, i32, i32
  }
  func.func @transform_1(%arg0: i32) -> (i32, i32) {
    %c0_i32 = arith.constant 0 : i32
    %c0_i32_0 = arith.constant 0 : i32
    %c0_i32_1 = arith.constant 0 : i32
    return %c0_i32, %c0_i32_0 : i32, i32
  }
  func.func @transform_2(%arg0: i32) -> (i32, i32) {
    %c0_i32 = arith.constant 0 : i32
    %c0_i32_0 = arith.constant 0 : i32
    %c0_i32_1 = arith.constant 0 : i32
    return %c0_i32, %c0_i32_0 : i32, i32
  }
  func.func @transform_3(%arg0: i32) -> (i32, i32) {
    %c0_i32 = arith.constant 0 : i32
    %c0_i32_0 = arith.constant 0 : i32
    %c0_i32_1 = arith.constant 0 : i32
    return %c0_i32, %c0_i32_0 : i32, i32
  }
  func.func @transform_4(%arg0: i32) -> (i32, i32) {
    %c0_i32 = arith.constant 0 : i32
    %c0_i32_0 = arith.constant 0 : i32
    %c0_i32_1 = arith.constant 0 : i32
    return %c0_i32, %c0_i32_0 : i32, i32
  }
  func.func @transform_5(%arg0: i32) -> (i32, i32) {
    %c0_i32 = arith.constant 0 : i32
    %c0_i32_0 = arith.constant 0 : i32
    %c0_i32_1 = arith.constant 0 : i32
    return %c0_i32, %c0_i32_0 : i32, i32
  }
  func.func @transform_6(%arg0: i32) -> (i32, i32) {
    %c0_i32 = arith.constant 0 : i32
    %c0_i32_0 = arith.constant 0 : i32
    %c0_i32_1 = arith.constant 0 : i32
    return %c0_i32, %c0_i32_0 : i32, i32
  }
  func.func @transform_7(%arg0: i32) -> (i32, i32, i32) {
    %c0_i32 = arith.constant 0 : i32
    %c0_i32_0 = arith.constant 0 : i32
    %c0_i32_1 = arith.constant 0 : i32
    return %arg0, %c0_i32, %c0_i32_0 : i32, i32, i32
  }
  func.func @transform_8(%arg0: i32) -> (i32, i32, i32) {
    %c0_i32 = arith.constant 0 : i32
    %c0_i32_0 = arith.constant 0 : i32
    %c0_i32_1 = arith.constant 0 : i32
    return %arg0, %c0_i32, %c0_i32_0 : i32, i32, i32
  }
  func.func @transform_9(%arg0: i32) -> (i32, i32, i32) {
    %c0_i32 = arith.constant 0 : i32
    %c0_i32_0 = arith.constant 0 : i32
    %c0_i32_1 = arith.constant 0 : i32
    return %arg0, %c0_i32, %c0_i32_0 : i32, i32, i32
  }
}

</mosaic_0001>

<bundles_post_ra>
// kernel: tpu_custom_call.1
= control target key start
LH: loop header
LB: loop body
LE: loop exit
PB: predicated region body
PF: predicated region fallthrough
CT: control target
= control target key end

     0   :  { %s1901_s0 = inlined_call_operand.hbm [shape: f32[2,8,32], index: 0, kind: input, shape index: {}]   ;;  %s1902_s1 = inlined_call_operand.hbm [shape: f32[32,64], index: 1, kind: input, shape index: {}]   ;;  %s1903_s2 = inlined_call_operand.hbm [shape: f32[32,32], index: 2, kind: input, shape index: {}]   ;;  %s1904_s3 = inlined_call_operand.vmem [shape: f32[1,48], index: 3, kind: input, shape index: {}]   ;;  %s1905_s4 = inlined_call_operand.vmem [shape: f32[1,48], index: 4, kind: input, shape index: {}]   ;;  %s1906_s5 = inlined_call_operand.hbm [shape: f32[48,48], index: 5, kind: input, shape index: {}]   ;;  %s1907_s6 = inlined_call_operand.hbm [shape: f32[48,48], index: 6, kind: input, shape index: {}]   ;;  %s1908_s7 = inlined_call_operand.hbm [shape: f32[2,8,48], index: 7, kind: input, shape index: {}]   ;;  %s1909_s8 = inlined_call_operand.hbm [shape: f32[2,8,48], index: 8, kind: input, shape index: {}]   ;;  %s1910_s9 = inlined_call_operand.hbm [shape: f32[2,8,32], index: 9, kind: output, shape index: {}]  }
   0x1   :  { %1921 = sst [smem:[#allocation24_spill]] %s1902_s1 }
   0x2   :  { %1922 = sst [smem:[#allocation25_spill]] %s1903_s2 }
   0x3   :  { %1923 = sst [smem:[#allocation26_spill]] %s1906_s5 }
   0x4   :  { %1924 = sst [smem:[#allocation27_spill]] %s1907_s6 }
   0x5   :  { %1925 = sst [smem:[#allocation28_spill]] %s1908_s7 }
   0x6   :  { %14 = vsyncpa [#allocation3], 0 }
   0x7   :  { %16 = vsyncpa [#allocation3 + $0x1], 0 }
   0x8   :  { %17 = vsyncpa [#allocation6], 0 }
   0x9   :  { %18 = vsyncpa [#allocation9], 0 }
   0xa   :  { %19 = vsyncpa [#allocation12], 0 }
   0xb   :  { %21 = vsyncpa [#allocation12 + $0x1], 0 }
   0xc   :  { %22 = vsyncpa [#allocation4], 0 }
   0xd   :  { %24 = vsyncpa [#allocation4 + $0x1], 0  ;;  %s1626_s30 = smov 0   ;;  %s1628_s10 = smov 0  }
   0xe   :  { %s1630_s11 = smov 0   ;;  %s1632_s12 = smov 0  }
   0xf LB: > { %1926 = sst [smem:[#allocation20_spill]] %s1557_s12  ;;  %s1650_s16 = sadd.s32 4294967295, %s1557_s12   ;;  %s1557_s12 = sphi %s1632_s12, %s1951_s12   ;;  %s1553_s11 = sphi %s1630_s11, %s1955_s11   ;;  %s1549_s10 = sphi %s1628_s10, %s1954_s10   ;;  %s1545_s30 = sphi %s1626_s30, %s1953_s30  }
  0x10   : > { %s1927_s1 = sld [smem:[#allocation24_spill]]  ;;  %p1097_p0 = scmp.ge.s32.totalorder %s1557_s12, 1 }
  0x11   : > { %p1919_p1 = scmp.eq.s32.totalorder %s1650_s16, 0  ;;  %p265_p2 = scmp.lt.s32.totalorder %s1557_s12, 3 }
  0x12   : > { %s1559_s18 = smov [#allocation5]   ;;  %s1929_s5 = sld [smem:[#allocation26_spill]] }
  0x13   : > { %p1655_p3 = pnand %p1097_p0, %p265_p2  ;;  %s278_s19 = sshll.u32 %s1559_s18, 4  ;;  %s279_s19 = int_to_ptr.vmem [resolvable:$true] %s278_s19 }
  0x14   : > { %s1560_s24 = smov [#allocation8]   ;;  %s1911_s26 = smov 128  }
  0x15   : > { %p1163_p4 = pneg %p1655_p3  ;;  %s312_s25 = sshll.u32 %s1560_s24, 4  ;;  %s313_s25 = int_to_ptr.vmem [resolvable:$true] %s312_s25 }
  0x16   : > { %s276_s15 = sshll.u32 %s1927_s1, 4  ;;  %s1913_s27 = smov 8   ;;  %s277_s15 = int_to_ptr.hbm [resolvable:$true] %s276_s15 }
  0x17   : > { %p1667_p6 = pnand %p1163_p4, %p1919_p1  ;;  %s1096_s28 = sadd.s32 4294967294, %s1557_s12  }
  0x18   : > { %s310_s22 = sshll.u32 %s1929_s5, 4  ;;  %s1683_s29 = sadd.s32 1, %s1557_s12   ;;  %s311_s22 = int_to_ptr.hbm [resolvable:$true] %s310_s22 }
  0x19   : > { %1166 = dma.hbm_to_vmem [thread:$0]  (!%p1667_p6), %s277_s15, 512, %s279_s19, [#allocation6], %s1911_s26, %s1911_s26, %s1913_s27  }
  0x1a   : > { %1172 = dma.hbm_to_vmem [thread:$0]  (!%p1667_p6), %s311_s22, 768, %s313_s25, [#allocation9], %s1911_s26, %s1911_s26, %s1913_s27  }
  0x1b   : > { %1931 = sst [smem:[#allocation21_spill]] %s1683_s29  ;;  %s34_s13 = ssub.s32 %s1557_s12, %s1683_s29 }
  0x1c   : > { %s37_s14 = sadd.s32 1, %s1553_s11  ;;  %p35_p7 = scmp.eq.s32.totalorder %s34_s13, 0 }
  0x1d   : > { %p44_p8 = scmp.ne.s32.totalorder %s1553_s11, %s1549_s10  ;;  %p45_p9 = scmp.eq.s32.totalorder %s1557_s12, 0 }
  0x1e   : > { %p50_p10 = scmp.ne.s32.totalorder %s1549_s10, %s1545_s30  ;;  %p252_p13 = scmp.eq.s32.totalorder %s1650_s16, 1 }
  0x1f   : > { %s1694_s15 = scalar_select %p35_p7, %s1553_s11, %s37_s14  }
  0x20   : > { %p46_p11 = por %p45_p9, %p44_p8  ;;  %p1698_p12 = por %p1919_p1, %p50_p10 }
  0x21   : > { %1932 = sst [smem:[#allocation22_spill]] %s1694_s15  ;;  %p258_p0 = scmp.eq.s32.totalorder %s1096_s28, 1 }
  0x22   : > { %p1194_p2 = scmp.lt.s32.totalorder %s1557_s12, 2  ;;  %s1915_s19 = sand.u32 1, %s1553_s11  }
  0x23   : > { %p1705_p4 = por %p252_p13, %p44_p8  ;;  %p1709_p5 = por %p258_p0, %p50_p10 }
  0x24   : > { %s1715_s22 = sshll.u32 %s1915_s19, 3  ;;  %s1718_s24 = sshll.u32 %s1557_s12, 3 }
  0x25   : > { %s1935_s21 = scalar_select %p1709_p5, 1, 0 }
  0x26   : > { %p1720_p7 = pnand %p1194_p2, %p46_p11  ;;  %s359_s28 = sand.u32 1, %s1557_s12  }
  0x27   : > { %1936 = sst [smem:[#allocation23_spill]] %s1935_s21  ;;  %s363_s1 = scalar_lea.vmem [#allocation11], %s1715_s22 }
  0x28   : > { %s1938_s7 = sld [smem:[#allocation28_spill]]  ;;  %s371_s5 = sshll.u32 %s363_s1, 4  ;;  %s372_s5 = int_to_ptr.vmem [resolvable:$true] %s371_s5 }
  0x29   : > { %s1730_s19 = scalar_lea.sflag [#allocation12], %s359_s28  ;;  %p1333_p9 = pneg %p1720_p7 }
  0x2e   : > { %s367_s26 = scalar_lea.hbm %s1938_s7, %s1718_s24 }
  0x2f   : > { %s369_s27 = sshll.u32 %s367_s26, 4  ;;  %s1336_s26 = scalar_lea.hbm %s1938_s7, 16  ;;  %s370_s27 = int_to_ptr.hbm [resolvable:$true] %s369_s27 }
  0x30   : > { %s1329_s15 = sshra.s32 %s370_s27, 4  ;;  %s1330_s15 = int_to_ptr.hbm [resolvable:$true] %s1329_s15 }
  0x31   : > { %s1331_s29 = scalar_lea.hbm %s1330_s15, 8  ;;  %p1337_p13 = scmp.lt.s32.totalorder %s1330_s15, %s1938_s7 }
  0x32   : > { %p1332_p8 = scmp.ne.s32.totalorder %s1330_s15, %s1331_s29  ;;  %p1338_p0 = scmp.lt.s32.totalorder %s1336_s26, %s1331_s29 }
  0x34   : > { %p1334_p10 = pnand %p1333_p9, %p1332_p8  ;;  %p1339_p2 = por %p1338_p0, %p1337_p13 }
  0x36   : > { %p1335_p11 = pneg %p1334_p10 }
  0x38   : > { %p1340_p1 = pnand %p1339_p2, %p1335_p11 }
  0x3a   : > { %1343 = shalt.err (!%p1340_p1)
}
  0x3b   : > { %1182 = dma.hbm_to_vmem [thread:$0]  (!%p1720_p7), %s370_s27, 128, %s372_s5, %s1730_s19  }
  0x3c   : > { %s1939_s2 = sld [smem:[#allocation25_spill]]  ;;  %s1563_s13 = smov [#allocation7]  }
  0x3d   : > { %s292_s15 = sshll.u32 %s1563_s13, 4  ;;  %s1940_s6 = sld [smem:[#allocation27_spill]]  ;;  %s293_s15 = int_to_ptr.vmem [resolvable:$true] %s292_s15 }
  0x3e   : > { %s1941_s1 = smov 8   ;;  %s1942_s7 = smov 128  }
  0x3f   : > { %s1564_s5 = smov [#allocation10]   ;;  %s348_s13 = scalar_lea.hbm %s1901_s0, %s1718_s24 }
  0x40   : > { %s326_s27 = sshll.u32 %s1564_s5, 4  ;;  %s344_s29 = scalar_lea.vmem [#allocation2], %s1715_s22  ;;  %s327_s27 = int_to_ptr.vmem [resolvable:$true] %s326_s27 }
  0x41   : > { %s352_s26 = sshll.u32 %s344_s29, 4  ;;  %s353_s26 = int_to_ptr.vmem [resolvable:$true] %s352_s26 }
  0x42   : > { %s290_s12 = sshll.u32 %s1939_s2, 4  ;;  %s350_s2 = sshll.u32 %s348_s13, 4  ;;  %s291_s12 = int_to_ptr.hbm [resolvable:$true] %s290_s12  ;;  %s351_s2 = int_to_ptr.hbm [resolvable:$true] %s350_s2 }
  0x43   : > { %s324_s14 = sshll.u32 %s1940_s6, 4  ;;  %s1419_s6 = sshra.s32 %s351_s2, 4  ;;  %s325_s14 = int_to_ptr.hbm [resolvable:$true] %s324_s14  ;;  %s1420_s6 = int_to_ptr.hbm [resolvable:$true] %s1419_s6 }
  0x44   : > { %1169 = dma.hbm_to_vmem [thread:$0]  (!%p1667_p6), %s291_s12, 512, %s293_s15, [#allocation6], %s1942_s7, %s1942_s7, %s1941_s1  }
  0x45   : > { %1175 = dma.hbm_to_vmem [thread:$0]  (!%p1667_p6), %s325_s14, 768, %s327_s27, [#allocation9], %s1942_s7, %s1942_s7, %s1941_s1  }
  0x46   : > { %s1943_s12 = sand.u32 1, %s1553_s11   ;;  %s1421_s5 = scalar_lea.hbm %s1420_s6, 8 }
  0x47   : > { %s341_s15 = scalar_lea.sflag [#allocation3], %s1943_s12  ;;  %p1422_p1 = scmp.ne.s32.totalorder %s1420_s6, %s1421_s5 }
  0x48   : > { %s1426_s14 = scalar_lea.hbm %s1901_s0, 16  ;;  %p1427_p6 = scmp.lt.s32.totalorder %s1420_s6, %s1901_s0 }
  0x49   : > { %p1424_p8 = pnand %p1422_p1, %p1333_p9  ;;  %p1428_p11 = scmp.lt.s32.totalorder %s1426_s14, %s1421_s5 }
  0x4b   : > { %p1425_p10 = pneg %p1424_p8  ;;  %p1429_p13 = por %p1428_p11, %p1427_p6 }
  0x4d   : > { %p1430_p0 = pnand %p1429_p13, %p1425_p10 }
  0x4f   : > { %1433 = shalt.err (!%p1430_p0)
}
  0x50   : > { %1179 = dma.hbm_to_vmem [thread:$0]  (!%p1720_p7), %s351_s2, 128, %s353_s26, %s341_s15  }
  0x51   : > { %s386_s13 = scalar_lea.hbm %s1909_s8, %s1718_s24  ;;  %s382_s29 = scalar_lea.vmem [#allocation13], %s1715_s22 }
  0x52   : > { %s390_s12 = sshll.u32 %s382_s29, 4  ;;  %s388_s7 = sshll.u32 %s386_s13, 4  ;;  %s391_s12 = int_to_ptr.vmem [resolvable:$true] %s390_s12  ;;  %s389_s7 = int_to_ptr.hbm [resolvable:$true] %s388_s7 }
  0x53   : > { %s1449_s6 = sshra.s32 %s389_s7, 4  ;;  %s1456_s2 = scalar_lea.hbm %s1909_s8, 16  ;;  %s1450_s6 = int_to_ptr.hbm [resolvable:$true] %s1449_s6 }
  0x54   : > { %s1451_s5 = scalar_lea.hbm %s1450_s6, 8  ;;  %p1457_p10 = scmp.lt.s32.totalorder %s1450_s6, %s1909_s8 }
  0x55   : > { %p1452_p2 = scmp.ne.s32.totalorder %s1450_s6, %s1451_s5  ;;  %p1458_p6 = scmp.lt.s32.totalorder %s1456_s2, %s1451_s5 }
  0x57   : > { %p1454_p1 = pnand %p1452_p2, %p1333_p9  ;;  %p1459_p11 = por %p1458_p6, %p1457_p10 }
  0x59   : > { %p1455_p8 = pneg %p1454_p1 }
  0x5b   : > { %p1460_p13 = pnand %p1459_p11, %p1455_p8 }
  0x5d   : > { %1463 = shalt.err (!%p1460_p13)
}
  0x5e   : > { %1185 = dma.hbm_to_vmem [thread:$0]  (!%p1720_p7), %s389_s7, 128, %s391_s12, %s1730_s19  }
  0x5f   : > { %399 = sbr.rel (%p1655_p3) target bundleno = 1581 (0x62d), region = 56  ;;  %s1800_s22 = sand.u32 (!%p1655_p3), 1, %s1549_s10  }
  0x60   : > { %s1803_s24 = sshll.u32 (!%p1655_p3), %s1800_s22, 3  ;;  %s402_s1 = scalar_lea.sflag (!%p1655_p3), [#allocation3], %s1800_s22 }
  0x61   : > { %s405_s27 = scalar_lea.vmem (!%p1655_p3), [#allocation2], %s1803_s24 }
  0x64   : > { %1524 = dma.done.wait (%p1698_p12), %s402_s1, 128  }
  0x65   : > { %1526 = vsyncadd (%p1698_p12), %s402_s1, 4294967168  ;;  %p1944_p7 = scmp.eq.s32.totalorder %s1650_s16, 0 }
  0x67   : > { %1528 = dma.done.wait (%p1944_p7), [#allocation6], 1024   ;;  %p1945_p3 = pmov %p1944_p7 }
  0x69   : > { %1530 = vsyncadd (%p1945_p3), [#allocation6], 4294966272  ;;  %p1946_p9 = pmov %p1945_p3 }
  0x6a   : > { %p1947_p0 = pmov %p1945_p3 }
  0x6b   : > { %1532 = dma.done.wait (%p1946_p9), [#allocation9], 1536  }
  0x6c   : > { %1534 = vsyncadd (%p1947_p0), [#allocation9], 4294965760  ;;  %s431_s17 = sand.u32 1, %s1650_s16   ;;  %s435_s25 = scalar_lea.vmem [#allocation11], %s1803_s24 }
  0x6d   : > { %s432_s19 = scalar_lea.sflag [#allocation12], %s431_s17 }
  0x6e   : > { %1536 = dma.done.wait (%p1698_p12), %s432_s19, 256  }
  0x6f   : > { %1538 = vsyncadd (%p1698_p12), %s432_s19, 4294967040  ;;  %v495_v0 = vld [vmem:[#allocation5 + $0x18] sm:$0xff]  ;;  %v494_v1 = vld [vmem:[#allocation5 + $0x10] sm:$0xff]  ;;  %vm496_vm0 = vcmask 261120   ;;  %vm526_vm1 = vcmask 392192   ;;  %s445_s29 = scalar_lea.vmem [#allocation13], %s1803_s24  ;;  %v631_v47 = vlaneseq }
  0x70   : > { %512 = vmatpush.msra.mxu0 %v495_v0  ;;  %v525_v2 = vld [vmem:[#allocation8 + $0x28] sm:$0xff]  ;;  %v524_v4 = vld [vmem:[#allocation8 + $0x20] sm:$0xff]  ;;  %v523_v5 = vld [vmem:[#allocation8 + $0x18] sm:$0xff]  ;;  %s1565_s12 = smov 88   ;;  %s1566_s7 = smov 96   ;;  %vm640_vm5 = vcmask 64512  }
  0x71   : > { %v493_v3 = vld [vmem:[#allocation5 + $0x8] sm:$0xff]  ;;  %540 = vmatpush.msra.mxu1 %v525_v2  ;;  %565 = vmatpush.msra.mxu2 %v525_v2  ;;  %v492_v6 = vld [vmem:[#allocation5] sm:$0xff]  ;;  %v491_v7 = vld [vmem:[%s405_s27] sm:$0xff]  ;;  %s1567_s6 = smov 112   ;;  %s1568_s5 = smov 104   ;;  %v632_v48 = vshrl.u32 %v631_v47, 7 }
  0x72   : > { %513 = vmatpush.msra.mxu0 %v494_v1  ;;  %v522_v8 = vld [vmem:[#allocation8 + $0x10] sm:$0xff]  ;;  %v521_v9 = vld [vmem:[#allocation8 + $0x8] sm:$0xff]  ;;  %v520_v10 = vld [vmem:[#allocation8] sm:$0xff]  ;;  %s1569_s23 = smov 120   ;;  %v634_v49 = vand.u32 127, %v631_v47  ;;  %s1571_s14 = smov 80  }
  0x73   : > { %541 = vmatpush.msra.mxu1 %v524_v4  ;;  %566 = vmatpush.msra.mxu2 %v524_v4  ;;  %v601_v15 = vld [vmem:[#allocation10 + $0x28] sm:$0xff]  ;;  %v600_v16 = vld [vmem:[#allocation10 + $0x20] sm:$0xff]  ;;  %v599_v17 = vld [vmem:[#allocation10 + $0x18] sm:$0xff]  ;;  %v1570_v50 = vmov -1e+09   ;;  %s1572_s2 = smov 72  }
  0x74   : > { %514 = vmatpush.msra.mxu0 %v493_v3  ;;  %615 = vmatpush.msra.mxu3 %v601_v15  ;;  %v598_v18 = vld [vmem:[#allocation10 + $0x10] sm:$0xff]  ;;  %v597_v19 = vld [vmem:[#allocation10 + $0x8] sm:$0xff]  ;;  %v596_v20 = vld [vmem:[#allocation10] sm:$0xff]  ;;  %vm635_vm6 = vcmp.ge.s32.totalorder %v632_v48, %v634_v49  ;;  %s1573_s26 = smov 8   ;;  %s1574_s15 = smov 16   ;;  %vm897_vm7 = vcmask 130048  }
  0x75   : > { %542 = vmatpush.msra.mxu1 %v523_v5  ;;  %567 = vmatpush.msra.mxu2 %v523_v5  ;;  %v1249_v29 = vld [vmem:[%s1904_s3] ss:$0 sm:$0xff]  ;;  %v625_v35 = vld [vmem:[%s435_s25] sm:$0xff]  ;;  %v636_v51 = vsel %vm635_vm6, 0.0, %v1570_v50  ;;  %s1575_s1 = smov 24   ;;  %vm899_vm8 = vcmask 195584  }
  0x76   : > { %515 = vmatpush.msra.mxu0 %v492_v6  ;;  %616 = vmatpush.msra.mxu3 %v600_v16  ;;  %v1250_v32 = vld [vmem:[%s1905_s4] ss:$0 sm:$0xff]  ;;  %s1136_s27 = sshll.u32 %s1650_s16, 3  ;;  %s490_s18 = scalar_lea.vmem [#allocation14], %s1803_s24 }
  0x77   : > { %1118 = vmatmul.msk.f32.vlgmr.msra.gmra.mxu0 %vm496_vm0, %v491_v7  ;;  %543 = vmatpush.msra.mxu1 %v522_v8  ;;  %v627_v36 = vld [vmem:[%s445_s29] sm:$0xff]  ;;  %s940_s25 = scalar_lea.hbm %s1910_s9, %s1136_s27  ;;  %s942_s21 = sshll.u32 %s490_s18, 4  ;;  %s943_s21 = int_to_ptr.vmem [resolvable:$true] %s942_s21 }
  0x78   : > { %568 = vmatpush.msra.mxu2 %v522_v8  ;;  %617 = vmatpush.msra.mxu3 %v599_v17  ;;  %s944_s28 = sshll.u32 %s940_s25, 4  ;;  %s930_s13 = scalar_lea.sflag [#allocation4], %s1800_s22  ;;  %s945_s28 = int_to_ptr.hbm [resolvable:$true] %s944_s28 }
  0x79   : > { %544 = vmatpush.msra.mxu1 %v521_v9  ;;  %s1493_s29 = sshra.s32 %s945_s28, 4  ;;  %s1494_s29 = int_to_ptr.hbm [resolvable:$true] %s1493_s29 }
  0x7a   : > { %569 = vmatpush.msra.mxu2 %v521_v9  ;;  %618 = vmatpush.msra.mxu3 %v598_v18  ;;  %p1500_p8 = scmp.lt.s32.totalorder %s1494_s29, %s1910_s9 }
  0x7b   : > { %545 = vmatpush.msra.mxu1 %v520_v10 }
  0x7c   : > { %570 = vmatpush.msra.mxu2 %v520_v10  ;;  %619 = vmatpush.msra.mxu3 %v597_v19 }
  0x7e   : > { %620 = vmatpush.msra.mxu3 %v596_v20 }
  0xf4   : > { %v1826_v11 = vpop.f32.mrf.mxu0 }
  0xf5   : > { %1119 = vmatmul.msk.f32.vlgmr.msra.gmra.mxu1 %vm526_vm1, %v1826_v11 }
 0x172   : > { %v547_v12 = vpop.f32.mrf.mxu1 }
 0x173   : > { %v550_v13 = vsub.f32 %v1826_v11, %v547_v12 }
 0x175   : > { %v551_v14 = vmul.f32 %v550_v13, %v550_v13 }
 0x177   : > { %1120 = vmatmul.msk.f32.vlgmr.msra.gmra.mxu2 %vm526_vm1, %v551_v14 }
 0x1fa   : > { %v572_v21 = vpop.f32.mrf.mxu2 }
 0x1fb   : > { %v573_v22 = vadd.f32 1e-05, %v572_v21 }
 0x1fd   : > { %1251 = vrsqrt.f32 %v573_v22  ;;  %vm581_vm3 = vweird.f32 %v573_v22 }
 0x203   : > { %v1252_v23 = vpop.eup %1251 }
 0x204   : > { %v576_v24 = vmul.f32 %v1252_v23, %v573_v22  ;;  %vm582_vm2 = vweird.f32 %v1252_v23 }
 0x205   : > { %vm583_vm4 = vmor %vm581_vm3, %vm582_vm2 }
 0x206   : > { %v577_v25 = vmul.f32 %v1252_v23, %v576_v24 }
 0x208   : > { %v578_v26 = vmul.f32 0.5, %v577_v25 }
 0x20a   : > { %v579_v27 = vsub.f32 1.5, %v578_v26 }
 0x20c   : > { %v580_v28 = vmul.f32 %v1252_v23, %v579_v27 }
 0x20e   : > { %v584_v30 = vsel %vm583_vm4, %v1252_v23, %v580_v28 }
 0x20f   : > { %v585_v31 = vmul.f32 %v584_v30, %v550_v13 }
 0x211   : > { %v590_v33 = vmul.f32 %v1249_v29, %v585_v31 }
 0x213   : > { %v595_v34 = vadd.f32 %v1250_v32, %v590_v33 }
 0x215   : > { %1121 = vmatmul.msk.f32.vlgmr.msra.gmra.mxu3 %vm526_vm1, %v595_v34  ;;  %v626_v38 = vmul.f32 %v625_v35, %v595_v34 }
 0x298   : > { %v622_v37 = vpop.f32.mrf.mxu3 }
 0x299   : > { %v628_v39 = vmul.f32 %v627_v36, %v622_v37 }
 0x29b   : > { %v629_v40 = vadd.f32 %v628_v39, %v626_v38  ;;  %v904_v38 = vld [vmem:[#allocation7 + $0x18] sm:$0xff]  ;;  %v903_v39 = vld [vmem:[#allocation7 + $0x10] sm:$0xff] }
 0x29d   : > { %v630_v41 = vmul.f32 0.35355338, %v629_v40  ;;  %763 = vrot.lane.b32.xlu1 %v629_v40, %s1565_s12  ;;  %638 = vrot.lane.b32.xlu0 %v629_v40, %s1566_s7  ;;  %v902_v40 = vld [vmem:[#allocation7 + $0x8] sm:$0xff]  ;;  %s1495_s12 = scalar_lea.hbm %s1494_s29, 8 }
 0x29e   : > { %p1496_p12 = scmp.ne.s32.totalorder %s1494_s29, %s1495_s12 }
 0x29f   : > { %761 = vrot.lane.b32.xlu2 %v630_v41, %s1567_s6  ;;  %s1499_s6 = scalar_lea.hbm %s1910_s9, 16 }
 0x2a0   : > { %p1497_p2 = pnand %p1496_p12, %p1705_p4  ;;  %p1501_p10 = scmp.lt.s32.totalorder %s1499_s6, %s1495_s12 }
 0x2a2   : > { %p1498_p1 = pneg %p1497_p2  ;;  %p1502_p6 = por %p1501_p10, %p1500_p8 }
 0x2a4   : > { %p1503_p11 = pnand %p1502_p6, %p1498_p1 }
 0x2a5   : > { %826 = vrot.lane.b32.xlu1 %v630_v41, %s1568_s5  ;;  %703 = vrot.lane.b32.xlu0 %v630_v41, %s1569_s23 }
 0x2f9   : > { %v762_v45 = vpop.permute.xlu2 %761 }
 0x30f   : > { %v764_v42 = vpop.permute.xlu1 %763  ;;  %v639_v43 = vpop.permute.xlu0 %638 }
 0x310   : > { %1122 = vmatpush.xpose.msk.msrb.mxu0 %vm640_vm5, %v639_v43  ;;  %1125 = vmatpush.xpose.msk.msrb.mxu2 %vm640_vm5, %v639_v43 }
 0x313   : > { %1123 = vmatmul.msk.f32.vlgmr.msrb.gmra.mxu0 %vm640_vm5, %v630_v41  ;;  %v901_v41 = vld [vmem:[#allocation7] sm:$0xff] }
 0x314   : > { %1128 = vmatpush.xpose.msk.msra.mxu0 %vm640_vm5, %v764_v42  ;;  %1131 = vmatpush.xpose.msk.msra.mxu2 %vm640_vm5, %v764_v42 }
 0x317   : > { %v704_v44 = vpop.permute.xlu0 %703  ;;  %v827_v46 = vpop.permute.xlu1 %826 }
 0x318   : > { %1126 = vmatmul.msk.f32.vlgmr.msrb.gmra.mxu2 %vm640_vm5, %v704_v44  ;;  %920 = vmatpush.msrb.mxu0 %v904_v38 }
 0x31a   : > { %921 = vmatpush.msrb.mxu0 %v903_v39 }
 0x31b   : > { %1129 = vmatmul.msk.f32.vlgmr.msra.gmra.mxu0 %vm640_vm5, %v762_v45 }
 0x31c   : > { %922 = vmatpush.msrb.mxu0 %v902_v40 }
 0x31e   : > { %923 = vmatpush.msrb.mxu0 %v901_v41 }
 0x320   : > { %1132 = vmatmul.msk.f32.vlgmr.msra.gmra.mxu2 %vm640_vm5, %v827_v46 }
 0x390   : > { %v663_v52 = vpop.f32.mrf.mxu0 }
 0x391   : > { %v664_v53 = vadd.f32 %v663_v52, %v636_v51 }
 0x393   : > { %v666_v54 = vsel %vm640_vm5, %v664_v53, -inf }
 0x394   : > { %667 = vmax.xlane.f32.xlu0 %v666_v54 }
 0x398   : > { %v786_v58 = vpop.f32.mrf.mxu0 }
 0x399   : > { %v787_v59 = vadd.f32 %v786_v58, %v636_v51 }
 0x39b   : > { %v724_v55 = vpop.f32.mrf.mxu2  ;;  %v789_v63 = vsel %vm640_vm5, %v787_v59, -inf }
 0x39c   : > { %v725_v56 = vadd.f32 %v724_v55, %v636_v51 }
 0x39e   : > { %v727_v57 = vsel %vm640_vm5, %v725_v56, -inf }
 0x39f   : > { %728 = vmax.xlane.f32.xlu2 %v727_v57 }
 0x3a3   : > { %v847_v60 = vpop.f32.mrf.mxu2 }
 0x3a4   : > { %v848_v61 = vadd.f32 %v847_v60, %v636_v51 }
 0x3a6   : > { %v850_v62 = vsel %vm640_vm5, %v848_v61, -inf }
 0x3a7   : > { %851 = vmax.xlane.f32.xlu1 %v850_v62  ;;  %790 = vmax.xlane.f32.xlu2 %v789_v63 }
 0x407   : > { %v668_v0 = vpop.xlane.xlu0 %667 }
 0x408   : > { %v669_v1 = vsub.f32 %v664_v53, %v668_v0 }
 0x40a   : > { %v670_v2 = vmul.f32 1.442695, %v669_v1 }
 0x40c   : > { %1253 = vpow2.f32 %v670_v2 }
 0x412   : > { %v1254_v3 = vpop.eup %1253  ;;  %v729_v4 = vpop.xlane.xlu2 %728 }
 0x413   : > { %v730_v5 = vsub.f32 %v725_v56, %v729_v4  ;;  %v672_v6 = vsel %vm640_vm5, %v1254_v3, 0.0 }
 0x414   : > { %673 = vadd.xlane.f32.xlu0 %v672_v6 }
 0x415   : > { %v731_v7 = vmul.f32 1.442695, %v730_v5 }
 0x417   : > { %1255 = vpow2.f32 %v731_v7 }
 0x41a   : > { %v852_v8 = vpop.xlane.xlu1 %851  ;;  %v791_v9 = vpop.xlane.xlu2 %790 }
 0x41b   : > { %v853_v10 = vsub.f32 %v848_v61, %v852_v8  ;;  %v792_v12 = vsub.f32 %v787_v59, %v791_v9 }
 0x41d   : > { %v1256_v13 = vpop.eup %1255  ;;  %v854_v14 = vmul.f32 1.442695, %v853_v10  ;;  %v793_v15 = vmul.f32 1.442695, %v792_v12 }
 0x41e   : > { %v733_v16 = vsel %vm640_vm5, %v1256_v13, 0.0 }
 0x41f   : > { %1257 = vpow2.f32 %v854_v14  ;;  %734 = vadd.xlane.f32.xlu2 %v733_v16 }
 0x420   : > { %1259 = vpow2.f32 %v793_v15 }
 0x425   : > { %v1258_v17 = vpop.eup %1257 }
 0x426   : > { %v1260_v18 = vpop.eup %1259  ;;  %v856_v19 = vsel %vm640_vm5, %v1258_v17, 0.0 }
 0x427   : > { %857 = vadd.xlane.f32.xlu1 %v856_v19  ;;  %v795_v20 = vsel %vm640_vm5, %v1260_v18, 0.0 }
 0x428   : > { %796 = vadd.xlane.f32.xlu0 %v795_v20 }
 0x437   : > { %677 = vrot.lane.b32.xlu2 %v1826_v11, %s1571_s14 }
 0x440   : > { %800 = vrot.lane.b32.xlu1 %v1826_v11, %s1572_s2 }
 0x487   : > { %v674_v21 = vpop.xlane.xlu0 %673 }
 0x488   : > { %1261 = vrcp.f32 %v674_v21 }
 0x48e   : > { %v1262_v23 = vpop.eup %1261 }
 0x48f   : > { %v676_v26 = vmul.f32 %v1262_v23, %v1254_v3 }
 0x492   : > { %v735_v22 = vpop.xlane.xlu2 %734 }
 0x493   : > { %1263 = vrcp.f32 %v735_v22 }
 0x499   : > { %v1264_v24 = vpop.eup %1263 }
 0x49a   : > { %v678_v25 = vpop.permute.xlu2 %677  ;;  %v737_v27 = vmul.f32 %v1264_v24, %v1256_v13  ;;  %v858_v28 = vpop.xlane.xlu1 %857 }
 0x49b   : > { %698 = vmatpush.msrb.mxu1 %v678_v25  ;;  %756 = vmatpush.msrb.mxu3 %v678_v25  ;;  %v797_v29 = vpop.xlane.xlu0 %796  ;;  %1265 = vrcp.f32 %v858_v28 }
 0x49c   : > { %1124 = vmatmul.msk.f32.vlgmr.msrb.gmra.mxu1 %vm640_vm5, %v676_v26  ;;  %1127 = vmatmul.msk.f32.vlgmr.msrb.gmra.mxu3 %vm640_vm5, %v737_v27  ;;  %1267 = vrcp.f32 %v797_v29 }
 0x4a1   : > { %v1266_v11 = vpop.eup %1265 }
 0x4a2   : > { %v1268_v30 = vpop.eup %1267  ;;  %v860_v31 = vmul.f32 %v1266_v11, %v1258_v17 }
 0x4a3   : > { %v799_v32 = vmul.f32 %v1268_v30, %v1260_v18 }
 0x4b2   : > { %v801_v33 = vpop.permute.xlu1 %800 }
 0x4b3   : > { %821 = vmatpush.msra.mxu1 %v801_v33  ;;  %879 = vmatpush.msra.mxu3 %v801_v33 }
 0x4b4   : > { %1130 = vmatmul.msk.f32.vlgmr.msra.gmra.mxu1 %vm640_vm5, %v799_v32  ;;  %1133 = vmatmul.msk.f32.vlgmr.msra.gmra.mxu3 %vm640_vm5, %v860_v31 }
 0x519   : > { %v700_v35 = vpop.f32.mrf.mxu1 }
 0x51f   : > { %v758_v34 = vpop.f32.mrf.mxu3 }
 0x520   : > { %885 = vrot.lane.b32.xlu0 %v758_v34, %s1573_s26 }
 0x531   : > { %v823_v36 = vpop.f32.mrf.mxu1 }
 0x532   : > { %889 = vrot.lane.b32.xlu2 %v823_v36, %s1574_s15 }
 0x537   : > { %v881_v37 = vpop.f32.mrf.mxu3 }
 0x538   : > { %893 = vrot.lane.b32.xlu1 %v881_v37, %s1575_s1 }
 0x58c   : > { %v890_v44 = vpop.permute.xlu2 %889 }
 0x592   : > { %v886_v42 = vpop.permute.xlu0 %885 }
 0x593   : > { %v896_v43 = vsel %vm640_vm5, %v700_v35, %v886_v42 }
 0x594   : > { %v898_v46 = vsel %vm897_vm7, %v896_v43, %v890_v44 }
 0x5aa   : > { %v894_v45 = vpop.permute.xlu1 %893 }
 0x5ab   : > { %v900_v47 = vsel %vm899_vm8, %v898_v46, %v894_v45 }
 0x5ac   : > { %1134 = vmatmul.msk.f32.vlgmr.msrb.gmra.mxu0 %vm496_vm0, %v900_v47 }
 0x629   : > { %v925_v48 = vpop.f32.mrf.mxu0 }
 0x62a   : > { %928 = vst.msk [vmem:[%s490_s18] sm:$0xff] %vm496_vm0, %v925_v48 }
 0x62b   : > { %1506 = shalt.err (!%p1503_p11)
}
 0x62c   : > { %1161 = dma.vmem_to_hbm [thread:$0]  (%p1705_p4), %s943_s21, 128, %s945_s28, %s930_s13  }
 0x62d PF: > { %s1949_s23 = sld [smem:[#allocation20_spill]]  ;;  %s956_s14 = sand.u32 1, %s1545_s30  }
 0x62e   : > { %s957_s2 = scalar_lea.sflag [#allocation4], %s956_s14 }
 0x633   : > { %p1950_p13 = scmp.ge.s32.totalorder %s1949_s23, 2 }
 0x635   : > { %p1187_p7 = pnand %p1950_p13, %p1709_p5 }
 0x637   : > { %p1188_p3 = pneg %p1187_p7 }
 0x639   : > { %1540 = dma.done.wait (%p1188_p3), %s957_s2, 128  }
 0x63a   : > { %1542 = vsyncadd (%p1188_p3), %s957_s2, 4294967168  ;;  %s1951_s12 = sld [smem:[#allocation21_spill]]  ;;  %s1953_s30 = smov %s1549_s10 }
 0x63b   : > { %s1952_s26 = sld [smem:[#allocation22_spill]]  ;;  %s1954_s10 = smov %s1553_s11 }
 0x640   : > { %p27_p9 = scmp.ge.s32.totalorder %s1951_s12, 4  }
 0x641   : > { %s1955_s11 = smov %s1952_s26 }
 0x642   :  { %29 = sbr.rel (!%p27_p9) target bundleno = 15 (0xf), region = 141 }
 0x647   :  { %963 = vsyncpa [#allocation3], 1 }
 0x648   :  { %965 = vsyncpa [#allocation3 + $0x1], 1 }
 0x649   :  { %966 = vsyncpa [#allocation6], 1 }
 0x64a   :  { %967 = vsyncpa [#allocation9], 1 }
 0x64b   :  { %968 = vsyncpa [#allocation12], 1 }
 0x64c   :  { %970 = vsyncpa [#allocation12 + $0x1], 1 }
 0x64d   :  { %971 = vsyncpa [#allocation4], 1 }
 0x64e   :  { %973 = vsyncpa [#allocation4 + $0x1], 1 }

</bundles_post_ra>
